<compile_context>
chip_gen: v5e
topology: v5e:2x2
jax: 0.10.0
libtpu: 0.0.40
codegen_flags: <defaults>
</compile_context>

<pallas_src>
import jax
import jax.numpy as jnp
import numpy as np
from jax.experimental import pallas as pl
from jax.experimental.pallas import tpu as pltpu


def _round_up(v, m):
    return (v + m - 1) // m * m


def _largest_divisor_tile(total, cap, step=128):
    """Largest multiple of `step` that is <= cap and divides `total`."""
    t = max(step, min(cap, total))
    t = (t // step) * step
    while t > step and total % t != 0:
        t -= step
    return t


_VMEM_BUDGET = 40 * 1024 * 1024   # conservative: fits v7x's 64 MiB physical VMEM
_VMEM_LIMIT = 48 * 1024 * 1024    # scoped-VMEM limit handed to Mosaic


def _choose_propagation_plan(n, fp, *, desired_tm=1024, desired_tk=512,
                             vmem_budget=_VMEM_BUDGET):
    """Pick node padding + tiles.  Guarantees tm | np_ and (tiled) tk | tm."""
    np128 = _round_up(n, 128)
    tm = max(128, (min(desired_tm, np128) // 128) * 128)
    # Keep >= 8 row blocks when the graph is big enough (v7x megacore / deeper
    # pipeline) instead of padding small graphs up to one giant tile.
    while tm > 128 and _round_up(n, tm) // tm < 8:
        tm -= 128
    np_ = _round_up(n, tm)

    def resident_bytes(t):
        # double-buffered bf16 A strip + (conservatively double-counted)
        # resident bf16 x + double-buffered bf16 output tile
        return 2 * (t * np_ * 2) + 2 * (np_ * fp * 2) + 2 * (t * fp * 2)

    tm_res = tm
    while tm_res > 128 and resident_bytes(tm_res) > vmem_budget:
        tm_res -= 128
    tm_res = _largest_divisor_tile(np_, tm_res)
    if resident_bytes(tm_res) <= vmem_budget:
        return {"mode": "resident", "np": np_, "tm": tm_res}

    tk = _largest_divisor_tile(tm, min(desired_tk, tm))   # tk | tm => tk | np_
    return {"mode": "tiled", "np": np_, "tm": tm, "tk": tk}


# ---------------------------------------------------------------------------
# Kernel 1a: propagation step with VMEM-resident x  (y = A_hat @ x)
#   A streamed in (tm, N) row strips, x loaded once, one dot per strip.
# ---------------------------------------------------------------------------
def _propagate_resident_kernel(a_ref, x_ref, o_ref):
    o_ref[...] = jnp.dot(a_ref[...], x_ref[...],
                         preferred_element_type=jnp.float32).astype(o_ref.dtype)


def _propagate_resident(a_bf, x_bf, *, tm):
    n = a_bf.shape[0]
    fp = x_bf.shape[1]
    ce = pl.CostEstimate(
        flops=2 * n * n * fp,
        transcendentals=0,
        bytes_accessed=2 * n * n + 2 * n * fp + 2 * n * fp)   # A + x + out (bf16)
    return pl.pallas_call(
        _propagate_resident_kernel,
        out_shape=jax.ShapeDtypeStruct((n, fp), jnp.bfloat16),
        grid=(n // tm,),
        in_specs=[
            pl.BlockSpec((tm, n), lambda i: (i, 0)),    # A row strip (streamed)
            pl.BlockSpec((n, fp), lambda i: (0, 0)),    # x (resident, loaded once)
        ],
        out_specs=pl.BlockSpec((tm, fp), lambda i: (i, 0)),
        compiler_params=pltpu.CompilerParams(
            dimension_semantics=("parallel",),
            vmem_limit_bytes=_VMEM_LIMIT),
        cost_estimate=ce,
    )(a_bf, x_bf)


# ---------------------------------------------------------------------------
# Kernel 1b: tiled propagation fallback (large graphs), f32 VMEM accumulator
# ---------------------------------------------------------------------------
def _propagate_tiled_kernel(a_ref, x_ref, o_ref, acc_ref):
    k = pl.program_id(1)

    @pl.when(k == 0)
    def _():
        acc_ref[...] = jnp.zeros_like(acc_ref)

    acc_ref[...] += jnp.dot(a_ref[...], x_ref[...],
                            preferred_element_type=jnp.float32)

    @pl.when(k == pl.num_programs(1) - 1)
    def _():
        o_ref[...] = acc_ref[...].astype(o_ref.dtype)


def _propagate_tiled(a_bf, x_bf, *, tm, tk):
    n = a_bf.shape[0]
    fp = x_bf.shape[1]
    ce = pl.CostEstimate(
        flops=2 * n * n * fp,
        transcendentals=0,
        # A once + x re-streamed once per row block + output
        bytes_accessed=2 * n * n + (n // tm) * n * fp * 2 + 2 * n * fp)
    return pl.pallas_call(
        _propagate_tiled_kernel,
        out_shape=jax.ShapeDtypeStruct((n, fp), jnp.bfloat16),
        grid=(n // tm, n // tk),
        in_specs=[
            pl.BlockSpec((tm, tk), lambda i, k: (i, k)),   # A tile
            pl.BlockSpec((tk, fp), lambda i, k: (k, 0)),   # x tile
        ],
        out_specs=pl.BlockSpec((tm, fp), lambda i, k: (i, 0)),
        scratch_shapes=[pltpu.VMEM((tm, fp), jnp.float32)],
        compiler_params=pltpu.CompilerParams(
            dimension_semantics=("parallel", "arbitrary"),
            vmem_limit_bytes=_VMEM_LIMIT),
        cost_estimate=ce,
    )(a_bf, x_bf)


# ---------------------------------------------------------------------------
# Kernel 2: row-tiled lin1 + ReLU + lin2 + log_softmax
#   Padded class columns are handled by the pre-poisoned b2 (= -1e30), so no
#   per-tile iota/where masking is needed.
# ---------------------------------------------------------------------------
def _mlp_logsoftmax_kernel(x_ref, w1_ref, b1_ref, w2_ref, b2_ref, o_ref):
    x = x_ref[...]                                          # (TM, Fp) bf16
    h = jnp.dot(x, w1_ref[...],
                preferred_element_type=jnp.float32) + b1_ref[...]
    h = jnp.maximum(h, 0.0)
    y = jnp.dot(h.astype(jnp.bfloat16), w2_ref[...],
                preferred_element_type=jnp.float32) + b2_ref[...]
    m = jnp.max(y, axis=1, keepdims=True)
    z = y - m
    lse = jnp.log(jnp.sum(jnp.exp(z), axis=1, keepdims=True))
    o_ref[...] = (z - lse).astype(o_ref.dtype)


def _mlp_logsoftmax(x_bf, w1_bf, b1_f32, w2_bf, b2_f32, *, tm):
    n, fp = x_bf.shape
    cp = w2_bf.shape[1]
    ce = pl.CostEstimate(
        flops=2 * n * fp * fp + 2 * n * fp * cp,
        transcendentals=n * cp,
        bytes_accessed=2 * (n * fp + fp * fp + fp * cp) + 4 * n * cp)
    return pl.pallas_call(
        _mlp_logsoftmax_kernel,
        out_shape=jax.ShapeDtypeStruct((n, cp), jnp.float32),
        grid=(n // tm,),
        in_specs=[
            pl.BlockSpec((tm, fp), lambda i: (i, 0)),   # node-feature tile
            pl.BlockSpec((fp, fp), lambda i: (0, 0)),   # W1 (resident)
            pl.BlockSpec((1, fp), lambda i: (0, 0)),    # b1
            pl.BlockSpec((fp, cp), lambda i: (0, 0)),   # W2 (resident)
            pl.BlockSpec((1, cp), lambda i: (0, 0)),    # b2 (padded cols = -1e30)
        ],
        out_specs=pl.BlockSpec((tm, cp), lambda i: (i, 0)),
        compiler_params=pltpu.CompilerParams(
            dimension_semantics=("parallel",),
            vmem_limit_bytes=_VMEM_LIMIT),
        cost_estimate=ce,
    )(x_bf, w1_bf, b1_f32, w2_bf, b2_f32)


# ---------------------------------------------------------------------------
# Wrapper: pad to TPU-friendly shapes, run K propagation steps + fused MLP
# ---------------------------------------------------------------------------
def sgc_forward(a_hat, x, w1, b1, w2, b2, *, K,
                desired_tm=1024, desired_tk=512, vmem_budget=_VMEM_BUDGET):
    """SGC forward.

    a_hat: (N, N) dense normalized adjacency (f32)
    x:     (N, F) node features (f32)
    w1:    (F, F), b1: (F,)   -- lin1, stored transposed (x @ w1 + b1)
    w2:    (F, C), b2: (C,)   -- lin2, stored transposed
    returns (N, C) log-softmax over classes.
    """
    n, f = x.shape
    c = w2.shape[1]
    fp = _round_up(f, 128)
    cp = _round_up(c, 128)

    plan = _choose_propagation_plan(n, fp, desired_tm=desired_tm,
                                    desired_tk=desired_tk,
                                    vmem_budget=vmem_budget)
    np_ = plan["np"]

    # Build padded operands directly in their kernel dtypes (no padded f32
    # (N,N) transient).  Callers running many forwards on the same graph
    # should hoist/cache a_bf.
    a_bf = jnp.zeros((np_, np_), jnp.bfloat16).at[:n, :n].set(
        a_hat.astype(jnp.bfloat16))
    h = jnp.zeros((np_, fp), jnp.bfloat16).at[:n, :f].set(
        x.astype(jnp.bfloat16))

    w1_bf = jnp.zeros((fp, fp), jnp.bfloat16).at[:f, :f].set(
        w1.astype(jnp.bfloat16))
    b1_p = jnp.zeros((1, fp), jnp.float32).at[0, :f].set(b1)
    w2_bf = jnp.zeros((fp, cp), jnp.bfloat16).at[:f, :c].set(
        w2.astype(jnp.bfloat16))
    # Poison padded class columns: their logits become -1e30 (f32) and vanish
    # from the softmax max/sum without any in-kernel masking.
    b2_p = jnp.full((1, cp), -1e30, jnp.float32).at[0, :c].set(b2)

    for _ in range(K):
        if plan["mode"] == "resident":
            h = _propagate_resident(a_bf, h, tm=plan["tm"])
        else:
            h = _propagate_tiled(a_bf, h, tm=plan["tm"], tk=plan["tk"])

    tm_mlp = _largest_divisor_tile(np_, min(1024, np_))
    out = _mlp_logsoftmax(h, w1_bf, b1_p, w2_bf, b2_p, tm=tm_mlp)
    return out[:n, :c]


# ---------------------------------------------------------------------------
# Plain-JAX glue + reference
# ---------------------------------------------------------------------------
def build_normalized_adjacency(edge_index, num_nodes):
    """Dense D^{-1/2} (A + I) D^{-1/2} from a [2, E] edge_index."""
    src, dst = edge_index[0], edge_index[1]
    a = jnp.zeros((num_nodes, num_nodes), jnp.float32)
    a = a.at[src, dst].set(1.0)
    a = a.at[dst, src].set(1.0)                     # undirected
    a = a + jnp.eye(num_nodes, dtype=jnp.float32)   # self-loops
    deg = jnp.sum(a, axis=1)
    d_inv_sqrt = jnp.where(deg > 0, 1.0 / jnp.sqrt(deg), 0.0)
    return a * d_inv_sqrt[:, None] * d_inv_sqrt[None, :]


def reference_forward(a_hat, x, w1, b1, w2, b2, K, *, matmul_dtype=jnp.float32):
    md = matmul_dtype
    a = a_hat.astype(md)
    h = x.astype(md)
    for _ in range(K):
        h = jnp.dot(a, h, preferred_element_type=jnp.float32).astype(md)
    z = jnp.dot(h, w1.astype(md),
                preferred_element_type=jnp.float32) + b1[None, :]
    z = jnp.maximum(z, 0.0)
    y = jnp.dot(z.astype(md), w2.astype(md),
                preferred_element_type=jnp.float32) + b2[None, :]
    return jax.nn.log_softmax(y, axis=1)


if __name__ == "__main__":
    # Small deterministic problem: N nodes (not a multiple of 128, to exercise
    # padding), in_features -> out_features, K propagation hops.
    N, in_features, out_features, K = 200, 16, 8, 2
    E = 800

    key = jax.random.PRNGKey(0)
    k_x, k_e, k_w1, k_b1, k_w2, k_b2 = jax.random.split(key, 6)

    x = jax.random.normal(k_x, (N, in_features), dtype=jnp.float32)
    edge_index = jax.random.randint(k_e, (2, E), 0, N, dtype=jnp.int32)
    a_hat = build_normalized_adjacency(edge_index, N)

    # PyTorch Linear stores weights as [out, in]; we keep them transposed
    # ([in, out]) so the kernel computes x @ W + b.
    lim1 = 1.0 / np.sqrt(in_features)
    w1 = jax.random.uniform(k_w1, (in_features, in_features),
                            minval=-lim1, maxval=lim1, dtype=jnp.float32)
    b1 = jax.random.uniform(k_b1, (in_features,),
                            minval=-lim1, maxval=lim1, dtype=jnp.float32)
    w2 = jax.random.uniform(k_w2, (in_features, out_features),
                            minval=-lim1, maxval=lim1, dtype=jnp.float32)
    b2 = jax.random.uniform(k_b2, (out_features,),
                            minval=-lim1, maxval=lim1, dtype=jnp.float32)

    # References: identical bf16-input / f32-accum numerics, and full f32.
    ref_bf16 = reference_forward(a_hat, x, w1, b1, w2, b2, K,
                                 matmul_dtype=jnp.bfloat16)
    ref_f32 = reference_forward(a_hat, x, w1, b1, w2, b2, K,
                                matmul_dtype=jnp.float32)

    # 1) Default path (resident-x propagation for this small graph).
    out = sgc_forward(a_hat, x, w1, b1, w2, b2, K=K)
    out = jax.block_until_ready(out)
    np.testing.assert_allclose(np.asarray(out), np.asarray(ref_bf16),
                               rtol=2e-3, atol=2e-3)
    max_diff = float(jnp.max(jnp.abs(out - ref_f32)))
    assert max_diff < 0.25, f"bf16 vs f32 drift too large: {max_diff}"

    # 2) Force the tiled-accumulator fallback path (used for large graphs) by
    #    giving it a zero VMEM budget, and check it too.
    out_tiled = sgc_forward(a_hat, x, w1, b1, w2, b2, K=K, vmem_budget=0)
    out_tiled = jax.block_until_ready(out_tiled)
    np.testing.assert_allclose(np.asarray(out_tiled), np.asarray(ref_bf16),
                               rtol=2e-3, atol=2e-3)

    print("KERNEL_OK")
</pallas_src>

<mosaic_0001>
module attributes {stable_mosaic.version = 11 : i64} {
  func.func @_propagate_resident_kernel(%arg0: i32, %arg1: memref<128x256xbf16, #tpu.memory_space<vmem>>, %arg2: memref<256x128xbf16, #tpu.memory_space<vmem>>, %arg3: memref<128x128xbf16, #tpu.memory_space<vmem>>) attributes {dimension_semantics = [#tpu.dimension_semantics<parallel>], iteration_bounds = array<i64: 2>, scalar_prefetch = 0 : i64, scratch_operands = 0 : i64, tpu.core_type = #tpu.core_type<tc>, window_params = [{transform_indices = @transform_0, window_bounds = array<i64: 128, 256>}, {pipeline_mode = #tpu.pipeline_mode<synchronous>, transform_indices = @transform_1, window_bounds = array<i64: 256, 128>}, {transform_indices = @transform_2, window_bounds = array<i64: 128, 128>}]} {
    %c0 = arith.constant 0 : index
    %c0_0 = arith.constant 0 : index
    %0 = vector.load %arg1[%c0, %c0_0] : memref<128x256xbf16, #tpu.memory_space<vmem>>, vector<128x256xbf16>
    %c0_1 = arith.constant 0 : index
    %c0_2 = arith.constant 0 : index
    %1 = vector.load %arg2[%c0_1, %c0_2] : memref<256x128xbf16, #tpu.memory_space<vmem>>, vector<256x128xbf16>
    %cst = arith.constant dense<0.000000e+00> : vector<128x128xf32>
    %2 = tpu.matmul %0, %1, %cst {dimension_numbers = #tpu.dot_dimension_numbers<[1], [0], [0], [1], [0, 0, 1, 1], [], []>} : vector<128x256xbf16>, vector<256x128xbf16>, vector<128x128xf32> -> vector<128x128xf32>
    %3 = arith.truncf %2 : vector<128x128xf32> to vector<128x128xbf16>
    %c0_3 = arith.constant 0 : index
    %c0_4 = arith.constant 0 : index
    %4 = vector.load %arg3[%c0_3, %c0_4] : memref<128x128xbf16, #tpu.memory_space<vmem>>, vector<128x128xbf16>
    tpu.vector_store %arg3[%c0_3, %c0_4], %3 {strides = array<i32>} : memref<128x128xbf16, #tpu.memory_space<vmem>>, vector<128x128xbf16>,
    return
  }
  func.func @transform_0(%arg0: i32) -> (i32, i32) {
    %c0_i32 = arith.constant 0 : i32
    %c0_i32_0 = arith.constant 0 : i32
    return %arg0, %c0_i32 : i32, i32
  }
  func.func @transform_1(%arg0: i32) -> (i32, i32) {
    %c0_i32 = arith.constant 0 : i32
    %c0_i32_0 = arith.constant 0 : i32
    %c0_i32_1 = arith.constant 0 : i32
    return %c0_i32, %c0_i32_0 : i32, i32
  }
  func.func @transform_2(%arg0: i32) -> (i32, i32) {
    %c0_i32 = arith.constant 0 : i32
    %c0_i32_0 = arith.constant 0 : i32
    return %arg0, %c0_i32 : i32, i32
  }
}

</mosaic_0001>

<bundles_post_ra>
// kernel: tpu_custom_call.1
= control target key start
LH: loop header
LB: loop body
LE: loop exit
PB: predicated region body
PF: predicated region fallthrough
CT: control target
= control target key end

     0   :  { %7 = vsyncpa [#allocation3], 0  ;;  %s1283_s0 = inlined_call_operand.hbm [shape: bf16[256,256], index: 0, kind: input, shape index: {}]   ;;  %s1284_s1 = inlined_call_operand.hbm [shape: bf16[256,128], index: 1, kind: input, shape index: {}]   ;;  %s1285_s2 = inlined_call_operand.hbm [shape: bf16[256,128], index: 2, kind: output, shape index: {}]  }
   0x1   :  { %9 = vsyncpa [#allocation3 + $0x1], 0 }
   0x2   :  { %10 = vsyncpa [#allocation6], 0 }
   0x3   :  { %11 = vsyncpa [#allocation4], 0 }
   0x4   :  { %13 = vsyncpa [#allocation4 + $0x1], 0  ;;  %s1097_s9 = smov 0   ;;  %s1099_s10 = smov 0  }
   0x5   :  { %s1101_s11 = smov 0   ;;  %s1103_s12 = smov 0  }
   0x6 LB: > { %s1118_s13 = sadd.s32 4294967295, %s1073_s12   ;;  %s637_s14 = sadd.s32 4294967294, %s1073_s12   ;;  %s1073_s12 = sphi %s1103_s12, %s1295_s12   ;;  %s1069_s11 = sphi %s1101_s11, %s1294_s11   ;;  %s1065_s10 = sphi %s1099_s10, %s1293_s10   ;;  %s1061_s9 = sphi %s1097_s9, %s1292_s9  }
   0x7   : > { %p39_p0 = scmp.ne.s32.totalorder %s1065_s10, %s1061_s9  ;;  %p40_p1 = scmp.eq.s32.totalorder %s1118_s13, 0 }
   0x8   : > { %p84_p2 = scmp.eq.s32.totalorder %s1118_s13, 1  ;;  %p90_p3 = scmp.eq.s32.totalorder %s637_s14, 1 }
   0x9   : > { %p1127_p4 = por %p40_p1, %p39_p0  ;;  %p638_p5 = scmp.ge.s32.totalorder %s1073_s12, 1 }
   0xa   : > { %p1132_p6 = por %p90_p3, %p39_p0  ;;  %p97_p7 = scmp.lt.s32.totalorder %s1073_s12, 3 }
   0xb   : > { %s108_s19 = sshll.u32 %s1284_s1, 4  ;;  %s1075_s21 = smov [#allocation5]   ;;  %s109_s19 = int_to_ptr.hbm [resolvable:$true] %s108_s19 }
   0xc   : > { %p1140_p8 = pnand %p638_p5, %p97_p7  ;;  %s110_s22 = sshll.u32 %s1075_s21, 4  ;;  %s111_s22 = int_to_ptr.vmem [resolvable:$true] %s110_s22 }
   0xd   : > { %s1150_s23 = sadd.s32 1, %s1073_s12   ;;  %s1076_s24 = smov 64  }
   0xe   : > { %p888_p9 = pneg %p1140_p8  ;;  %s1077_s25 = smov 4  }
   0xf   : > { %s23_s26 = ssub.s32 %s1073_s12, %s1150_s23  ;;  %s26_s27 = sadd.s32 1, %s1069_s11 }
  0x10   : > { %p889_p10 = pnand %p888_p9, %p40_p1  ;;  %p24_p12 = scmp.eq.s32.totalorder %s23_s26, 0 }
  0x11   : > { %p33_p13 = scmp.ne.s32.totalorder %s1069_s11, %s1065_s10  ;;  %p34_p0 = scmp.eq.s32.totalorder %s1073_s12, 0 }
  0x12   : > { %891 = dma.hbm_to_vmem [thread:$0]  (!%p889_p10), %s109_s19, 2048, %s111_s22, [#allocation6], %s1076_s24, %s1076_s24, %s1077_s25  }
  0x13   : > { %p901_p3 = scmp.lt.s32.totalorder %s1073_s12, 2  ;;  %p35_p5 = por %p34_p0, %p33_p13 }
  0x14   : > { %s1160_s28 = scalar_select %p24_p12, %s1069_s11, %s26_s27  }
  0x15   : > { %p1164_p7 = por %p84_p2, %p33_p13  ;;  %s124_s30 = sand.u32 1, %s1069_s11  }
  0x16   : > { %s783_s3 = sshll.u32 %s1073_s12, 7  ;;  %s641_s4 = sshll.u32 %s124_s30, 7 }
  0x17   : > { %s134_s7 = scalar_lea.hbm %s1283_s0, %s783_s3  ;;  %s128_s14 = scalar_lea.vmem [#allocation2], %s641_s4 }
  0x18   : > { %s135_s8 = sshll.u32 %s134_s7, 4  ;;  %s137_s17 = sshll.u32 %s128_s14, 4  ;;  %s136_s8 = int_to_ptr.hbm [resolvable:$true] %s135_s8  ;;  %s138_s17 = int_to_ptr.vmem [resolvable:$true] %s137_s17 }
  0x19   : > { %p1175_p9 = pnand %p901_p3, %p35_p5  ;;  %s125_s19 = scalar_lea.sflag [#allocation3], %s124_s30 }
  0x1a   : > { %s973_s21 = sshra.s32 %s136_s8, 4  ;;  %s980_s26 = scalar_lea.hbm %s1283_s0, 256  ;;  %s974_s21 = int_to_ptr.hbm [resolvable:$true] %s973_s21 }
  0x1b   : > { %s975_s22 = scalar_lea.hbm %s974_s21, 128  ;;  %p977_p10 = pneg %p1175_p9 }
  0x1c   : > { %p976_p2 = scmp.ne.s32.totalorder %s974_s21, %s975_s22  ;;  %p981_p0 = scmp.lt.s32.totalorder %s974_s21, %s1283_s0 }
  0x1d   : > { %p982_p3 = scmp.lt.s32.totalorder %s980_s26, %s975_s22 }
  0x1e   : > { %p978_p12 = pnand %p977_p10, %p976_p2 }
  0x1f   : > { %p983_p5 = por %p982_p3, %p981_p0 }
  0x20   : > { %p979_p13 = pneg %p978_p12 }
  0x22   : > { %p984_p11 = pnand %p983_p5, %p979_p13 }
  0x24   : > { %987 = shalt.err (!%p984_p11)
}
  0x25   : > { %s1078_s30 = smov 128   ;;  %s1079_s4 = smov 8  }
  0x26   : > { %895 = dma.hbm_to_vmem [thread:$0]  (!%p1175_p9), %s136_s8, 2048, %s138_s17, %s125_s19, %s1078_s30, %s1078_s30, %s1079_s4  }
  0x27   : > { %149 = sbr.rel (%p1140_p8) target bundleno = 276 (0x114), region = 28  ;;  %s1192_s5 = sand.u32 (!%p1140_p8), 1, %s1065_s10  }
  0x28   : > { %s646_s6 = sshll.u32 (!%p1140_p8), %s1192_s5, 7  ;;  %s152_s7 = scalar_lea.sflag (!%p1140_p8), [#allocation3], %s1192_s5 }
  0x29   : > { %s1196_s14 = scalar_lea.vmem (!%p1140_p8), [#allocation2], %s646_s6 }
  0x2c   : > { %1048 = dma.done.wait (%p1127_p4), %s152_s7, 2048  }
  0x2d   : > { %1050 = vsyncadd (%p1127_p4), %s152_s7, 4294965248 }
  0x2e   : > { %1052 = dma.done.wait (%p40_p1), [#allocation6], 2048  }
  0x2f   : > { %1054 = vsyncadd (%p40_p1), [#allocation6], 4294965248  ;;  %v807_v0 = vld [vmem:[#allocation5 + $0x38] sm:$0xff]  ;;  %v806_v2 = vld [vmem:[#allocation5 + $0x30] sm:$0xff]  ;;  %s648_s15 = sshll.u32 %s1192_s5, 6  ;;  %s816_s8 = sshll.u32 %s1118_s13, 6 }
  0x30   : > { %v815_v1 = vld [vmem:[#allocation5 + $0x78] sm:$0xff]  ;;  %408 = vmatpush.bf16.msra.mxu0 %v807_v0  ;;  %864 = vmatpush.bf16.msra.mxu2 %v807_v0  ;;  %v814_v3 = vld [vmem:[#allocation5 + $0x70] sm:$0xff]  ;;  %v805_v4 = vld [vmem:[#allocation5 + $0x28] sm:$0xff]  ;;  %s1239_s20 = scalar_lea.vmem [#allocation7], %s648_s15  ;;  %s550_s19 = scalar_lea.hbm %s1285_s2, %s816_s8 }
  0x31   : > { %457 = vmatpush.bf16.msra.mxu1 %v815_v1  ;;  %872 = vmatpush.bf16.msra.mxu3 %v815_v1  ;;  %v813_v5 = vld [vmem:[#allocation5 + $0x68] sm:$0xff]  ;;  %v804_v6 = vld [vmem:[#allocation5 + $0x20] sm:$0xff]  ;;  %v803_v8 = vld [vmem:[#allocation5 + $0x18] sm:$0xff]  ;;  %s551_s21 = sshll.u32 %s1239_s20, 4  ;;  %s553_s22 = sshll.u32 %s550_s19, 4  ;;  %s552_s21 = int_to_ptr.vmem [resolvable:$true] %s551_s21  ;;  %s554_s22 = int_to_ptr.hbm [resolvable:$true] %s553_s22 }
  0x32   : > { %v812_v7 = vld [vmem:[#allocation5 + $0x60] sm:$0xff]  ;;  %v811_v9 = vld [vmem:[#allocation5 + $0x58] sm:$0xff]  ;;  %v802_v10 = vld [vmem:[#allocation5 + $0x10] sm:$0xff]  ;;  %s539_s13 = scalar_lea.sflag [#allocation4], %s1192_s5  ;;  %s1017_s24 = sshra.s32 %s554_s22, 4  ;;  %s1018_s24 = int_to_ptr.hbm [resolvable:$true] %s1017_s24 }
  0x33   : > { %v810_v11 = vld [vmem:[#allocation5 + $0x50] sm:$0xff]  ;;  %v801_v12 = vld [vmem:[#allocation5 + $0x8] sm:$0xff]  ;;  %v800_v14 = vld [vmem:[#allocation5] sm:$0xff]  ;;  %s1019_s25 = scalar_lea.hbm %s1018_s24, 64  ;;  %s1023_s3 = scalar_lea.hbm %s1285_s2, 128 }
  0x34   : > { %409 = vmatpush.bf16.msra.mxu0 %v806_v2  ;;  %865 = vmatpush.bf16.msra.mxu2 %v806_v2  ;;  %v809_v13 = vld [vmem:[#allocation5 + $0x48] sm:$0xff]  ;;  %v808_v15 = vld [vmem:[#allocation5 + $0x40] sm:$0xff]  ;;  %v659_v28 = vld [vmem:[%s1196_s14 + $0x10] sm:$0xf]  ;;  %p1020_p1 = scmp.ne.s32.totalorder %s1018_s24, %s1019_s25  ;;  %p1024_p11 = scmp.lt.s32.totalorder %s1018_s24, %s1285_s2 }
  0x35   : > { %458 = vmatpush.bf16.msra.mxu1 %v814_v3  ;;  %873 = vmatpush.bf16.msra.mxu3 %v814_v3  ;;  %v651_v16 = vld [vmem:[%s1196_s14] sm:$0xf]  ;;  %v785_v17 = vld [vmem:[%s1196_s14 + $0x4] sm:$0xf0]  ;;  %v784_v20 = vld [vmem:[%s1196_s14 + $0x4] sm:$0xf]  ;;  %p1025_p9 = scmp.lt.s32.totalorder %s1023_s3, %s1019_s25 }
  0x36   : > { %v683_v18 = vld [vmem:[%s1196_s14 + $0x40] sm:$0xf]  ;;  %v793_v19 = vld [vmem:[%s1196_s14 + $0x44] sm:$0xf0]  ;;  %v653_v21 = vld [vmem:[%s1196_s14 + $0x8] sm:$0xf0]  ;;  %v652_v24 = vor.u32 %v785_v17, %v651_v16  ;;  %p1021_p4 = pnand %p1020_p1, %p1164_p7 }
  0x37   : > { %v792_v22 = vld [vmem:[%s1196_s14 + $0x44] sm:$0xf]  ;;  %v685_v23 = vld [vmem:[%s1196_s14 + $0x48] sm:$0xf0]  ;;  %v684_v25 = vor.u32 %v793_v19, %v683_v18  ;;  %v656_v26 = vor.u32 %v784_v20, %v653_v21  ;;  %v787_v29 = vld [vmem:[%s1196_s14 + $0x14] sm:$0xf0]  ;;  %p1026_p2 = por %p1025_p9, %p1024_p11 }
  0x38   : > { %410 = vmatpush.bf16.msra.mxu0 %v805_v4  ;;  %866 = vmatpush.bf16.msra.mxu2 %v805_v4  ;;  %v688_v27 = vor.u32 %v792_v22, %v685_v23  ;;  %v691_v30 = vld [vmem:[%s1196_s14 + $0x50] sm:$0xf]  ;;  %v795_v31 = vld [vmem:[%s1196_s14 + $0x54] sm:$0xf0]  ;;  %v786_v32 = vld [vmem:[%s1196_s14 + $0x14] sm:$0xf]  ;;  %v660_v36 = vor.u32 %v787_v29, %v659_v28  ;;  %p1022_p8 = pneg %p1021_p4 }
  0x39   : > { %459 = vmatpush.bf16.msra.mxu1 %v813_v5  ;;  %874 = vmatpush.bf16.msra.mxu3 %v813_v5  ;;  %v661_v33 = vld [vmem:[%s1196_s14 + $0x18] sm:$0xf0]  ;;  %v794_v34 = vld [vmem:[%s1196_s14 + $0x54] sm:$0xf]  ;;  %v692_v37 = vor.u32 %v795_v31, %v691_v30  ;;  %v667_v40 = vld [vmem:[%s1196_s14 + $0x20] sm:$0xf] }
  0x3a   : > { %v693_v35 = vld [vmem:[%s1196_s14 + $0x58] sm:$0xf0]  ;;  %v664_v38 = vor.u32 %v786_v32, %v661_v33  ;;  %v789_v41 = vld [vmem:[%s1196_s14 + $0x24] sm:$0xf0]  ;;  %v699_v42 = vld [vmem:[%s1196_s14 + $0x60] sm:$0xf]  ;;  %p1027_p10 = pnand %p1026_p2, %p1022_p8 }
  0x3b   : > { %v696_v39 = vor.u32 %v794_v34, %v693_v35  ;;  %v797_v43 = vld [vmem:[%s1196_s14 + $0x64] sm:$0xf0]  ;;  %v788_v44 = vld [vmem:[%s1196_s14 + $0x24] sm:$0xf]  ;;  %v669_v45 = vld [vmem:[%s1196_s14 + $0x28] sm:$0xf0]  ;;  %v668_v48 = vor.u32 %v789_v41, %v667_v40 }
  0x3c   : > { %411 = vmatpush.bf16.msra.mxu0 %v804_v6  ;;  %867 = vmatpush.bf16.msra.mxu2 %v804_v6  ;;  %v796_v46 = vld [vmem:[%s1196_s14 + $0x64] sm:$0xf]  ;;  %v701_v47 = vld [vmem:[%s1196_s14 + $0x68] sm:$0xf0]  ;;  %v700_v49 = vor.u32 %v797_v43, %v699_v42  ;;  %v672_v50 = vor.u32 %v788_v44, %v669_v45  ;;  %v675_v52 = vld [vmem:[%s1196_s14 + $0x30] sm:$0xf] }
  0x3d   : > { %460 = vmatpush.bf16.msra.mxu1 %v812_v7  ;;  %875 = vmatpush.bf16.msra.mxu3 %v812_v7  ;;  %v704_v51 = vor.u32 %v796_v46, %v701_v47  ;;  %v791_v53 = vld [vmem:[%s1196_s14 + $0x34] sm:$0xf0]  ;;  %v707_v54 = vld [vmem:[%s1196_s14 + $0x70] sm:$0xf]  ;;  %v790_v56 = vld [vmem:[%s1196_s14 + $0x34] sm:$0xf] }
  0x3e   : > { %v799_v55 = vld [vmem:[%s1196_s14 + $0x74] sm:$0xf0]  ;;  %v677_v57 = vld [vmem:[%s1196_s14 + $0x38] sm:$0xf0]  ;;  %v798_v58 = vld [vmem:[%s1196_s14 + $0x74] sm:$0xf]  ;;  %v676_v60 = vor.u32 %v791_v53, %v675_v52 }
  0x3f   : > { %v709_v59 = vld [vmem:[%s1196_s14 + $0x78] sm:$0xf0]  ;;  %v708_v61 = vor.u32 %v799_v55, %v707_v54  ;;  %v680_v62 = vor.u32 %v790_v56, %v677_v57 }
  0x40   : > { %412 = vmatpush.bf16.msra.mxu0 %v803_v8  ;;  %868 = vmatpush.bf16.msra.mxu2 %v803_v8  ;;  %v712_v63 = vor.u32 %v798_v58, %v709_v59 }
  0x41   : > { %461 = vmatpush.bf16.msra.mxu1 %v811_v9  ;;  %876 = vmatpush.bf16.msra.mxu3 %v811_v9 }
  0x44   : > { %413 = vmatpush.bf16.msra.mxu0 %v802_v10  ;;  %869 = vmatpush.bf16.msra.mxu2 %v802_v10 }
  0x45   : > { %462 = vmatpush.bf16.msra.mxu1 %v810_v11  ;;  %877 = vmatpush.bf16.msra.mxu3 %v810_v11 }
  0x48   : > { %414 = vmatpush.bf16.msra.mxu0 %v801_v12  ;;  %870 = vmatpush.bf16.msra.mxu2 %v801_v12 }
  0x49   : > { %463 = vmatpush.bf16.msra.mxu1 %v809_v13  ;;  %878 = vmatpush.bf16.msra.mxu3 %v809_v13 }
  0x4c   : > { %415 = vmatpush.bf16.msra.mxu0 %v800_v14  ;;  %871 = vmatpush.bf16.msra.mxu2 %v800_v14 }
  0x4d   : > { %464 = vmatpush.bf16.msra.mxu1 %v808_v15  ;;  %879 = vmatpush.bf16.msra.mxu3 %v808_v15 }
  0x4f   : > { %416 = vmatmul.bf16.vlgmr.msra.gmra.mxu0 %v652_v24  ;;  %436 = vmatmul.bf16.vlgmr.msra.gmra.mxu2 %v684_v25 }
  0x50   : > { %465 = vmatmul.bf16.vlgmr.msra.gmra.mxu1 %v656_v26  ;;  %485 = vmatmul.bf16.vlgmr.msra.gmra.mxu3 %v688_v27 }
  0x5f   : > { %421 = vmatmul.bf16.gmra.mxu0 %v660_v36  ;;  %441 = vmatmul.bf16.gmra.mxu2 %v692_v37 }
  0x60   : > { %470 = vmatmul.bf16.gmra.mxu1 %v664_v38  ;;  %490 = vmatmul.bf16.gmra.mxu3 %v696_v39 }
  0x6f   : > { %426 = vmatmul.bf16.gmra.mxu0 %v668_v48  ;;  %446 = vmatmul.bf16.gmra.mxu2 %v700_v49 }
  0x70   : > { %475 = vmatmul.bf16.gmra.mxu1 %v672_v50  ;;  %495 = vmatmul.bf16.gmra.mxu3 %v704_v51 }
  0x7f   : > { %431 = vmatmul.bf16.gmra.mxu0 %v676_v60  ;;  %451 = vmatmul.bf16.gmra.mxu2 %v708_v61 }
  0x80   : > { %480 = vmatmul.bf16.gmra.mxu1 %v680_v62  ;;  %500 = vmatmul.bf16.gmra.mxu3 %v712_v63 }
  0xcc   : > { %v417_v0 = vpop.f32.mrf.mxu0 }
  0xcd   : > { %v466_v1 = vpop.f32.mrf.mxu1 }
  0xce   : > { %v467_v6 = vadd.f32 %v466_v1, %v417_v0 }
  0xd2   : > { %v437_v2 = vpop.f32.mrf.mxu2 }
  0xd3   : > { %v486_v3 = vpop.f32.mrf.mxu3 }
  0xd4   : > { %v419_v4 = vpop.f32.mrf.mxu0  ;;  %v487_v11 = vadd.f32 %v486_v3, %v437_v2 }
  0xd5   : > { %v468_v5 = vpop.f32.mrf.mxu1 }
  0xd6   : > { %v469_v7 = vadd.f32 %v468_v5, %v419_v4 }
  0xd8   : > { %v820_v8 = vpack.c.bf16 %v469_v7, %v467_v6 }
  0xda   : > { %821 = vst [vmem:[%s1239_s20] sm:$0xff] %v820_v8   ;;  %v439_v9 = vpop.f32.mrf.mxu2 }
  0xdb   : > { %v488_v10 = vpop.f32.mrf.mxu3 }
  0xdc   : > { %v489_v12 = vadd.f32 %v488_v10, %v439_v9  ;;  %v422_v13 = vpop.f32.mrf.mxu0 }
  0xdd   : > { %v471_v14 = vpop.f32.mrf.mxu1 }
  0xde   : > { %v840_v15 = vpack.c.bf16 %v489_v12, %v487_v11  ;;  %v472_v20 = vadd.f32 %v471_v14, %v422_v13 }
  0xe0   : > { %860 = vst [vmem:[%s1239_s20 + $0x20] sm:$0xff] %v840_v15  }
  0xe2   : > { %v442_v16 = vpop.f32.mrf.mxu2 }
  0xe3   : > { %v491_v17 = vpop.f32.mrf.mxu3 }
  0xe4   : > { %v424_v18 = vpop.f32.mrf.mxu0  ;;  %v492_v25 = vadd.f32 %v491_v17, %v442_v16 }
  0xe5   : > { %v473_v19 = vpop.f32.mrf.mxu1 }
  0xe6   : > { %v474_v21 = vadd.f32 %v473_v19, %v424_v18 }
  0xe8   : > { %v825_v22 = vpack.c.bf16 %v474_v21, %v472_v20 }
  0xea   : > { %857 = vst [vmem:[%s1239_s20 + $0x8] sm:$0xff] %v825_v22   ;;  %v444_v23 = vpop.f32.mrf.mxu2 }
  0xeb   : > { %v493_v24 = vpop.f32.mrf.mxu3 }
  0xec   : > { %v494_v26 = vadd.f32 %v493_v24, %v444_v23  ;;  %v427_v27 = vpop.f32.mrf.mxu0 }
  0xed   : > { %v476_v28 = vpop.f32.mrf.mxu1 }
  0xee   : > { %v845_v29 = vpack.c.bf16 %v494_v26, %v492_v25  ;;  %v477_v34 = vadd.f32 %v476_v28, %v427_v27 }
  0xf0   : > { %861 = vst [vmem:[%s1239_s20 + $0x28] sm:$0xff] %v845_v29  }
  0xf2   : > { %v447_v30 = vpop.f32.mrf.mxu2 }
  0xf3   : > { %v496_v31 = vpop.f32.mrf.mxu3 }
  0xf4   : > { %v429_v32 = vpop.f32.mrf.mxu0  ;;  %v497_v39 = vadd.f32 %v496_v31, %v447_v30 }
  0xf5   : > { %v478_v33 = vpop.f32.mrf.mxu1 }
  0xf6   : > { %v479_v35 = vadd.f32 %v478_v33, %v429_v32 }
  0xf8   : > { %v830_v36 = vpack.c.bf16 %v479_v35, %v477_v34 }
  0xfa   : > { %858 = vst [vmem:[%s1239_s20 + $0x10] sm:$0xff] %v830_v36   ;;  %v449_v37 = vpop.f32.mrf.mxu2 }
  0xfb   : > { %v498_v38 = vpop.f32.mrf.mxu3 }
  0xfc   : > { %v499_v40 = vadd.f32 %v498_v38, %v449_v37  ;;  %v432_v41 = vpop.f32.mrf.mxu0 }
  0xfd   : > { %v481_v42 = vpop.f32.mrf.mxu1 }
  0xfe   : > { %v850_v43 = vpack.c.bf16 %v499_v40, %v497_v39  ;;  %v482_v48 = vadd.f32 %v481_v42, %v432_v41 }
 0x100   : > { %862 = vst [vmem:[%s1239_s20 + $0x30] sm:$0xff] %v850_v43  }
 0x102   : > { %v452_v44 = vpop.f32.mrf.mxu2 }
 0x103   : > { %v501_v45 = vpop.f32.mrf.mxu3 }
 0x104   : > { %v434_v46 = vpop.f32.mrf.mxu0  ;;  %v502_v53 = vadd.f32 %v501_v45, %v452_v44 }
 0x105   : > { %v483_v47 = vpop.f32.mrf.mxu1 }
 0x106   : > { %v484_v49 = vadd.f32 %v483_v47, %v434_v46 }
 0x108   : > { %v835_v50 = vpack.c.bf16 %v484_v49, %v482_v48 }
 0x10a   : > { %859 = vst [vmem:[%s1239_s20 + $0x18] sm:$0xff] %v835_v50   ;;  %v454_v51 = vpop.f32.mrf.mxu2 }
 0x10b   : > { %v503_v52 = vpop.f32.mrf.mxu3 }
 0x10c   : > { %v504_v54 = vadd.f32 %v503_v52, %v454_v51 }
 0x10e   : > { %v855_v55 = vpack.c.bf16 %v504_v54, %v502_v53 }
 0x110   : > { %863 = vst [vmem:[%s1239_s20 + $0x38] sm:$0xff] %v855_v55  }
 0x111   : > { %1030 = shalt.err (!%p1027_p10)
}
 0x112   : > { %s1080_s5 = smov 64   ;;  %s1081_s6 = smov 4  }
 0x113   : > { %886 = dma.vmem_to_hbm [thread:$0]  (%p1164_p7), %s552_s21, 1024, %s554_s22, %s539_s13, %s1080_s5, %s1080_s5, %s1081_s6  }
 0x114 PF: > { %s568_s7 = sand.u32 1, %s1061_s9   ;;  %p1291_p12 = scmp.ge.s32.totalorder %s1073_s12, 2 }
 0x115   : > { %s569_s14 = scalar_lea.sflag [#allocation4], %s568_s7 }
 0x116   : > { %p897_p13 = pnand %p1291_p12, %p1132_p6 }
 0x118   : > { %p898_p0 = pneg %p897_p13 }
 0x11a   : > { %1056 = dma.done.wait (%p898_p0), %s569_s14, 1024  }
 0x11b   : > { %1058 = vsyncadd (%p898_p0), %s569_s14, 4294966272  ;;  %p16_p3 = scmp.ge.s32.totalorder %s1150_s23, 4   ;;  %s1292_s9 = smov %s1065_s10 }
 0x11c   : > { %s1293_s10 = smov %s1069_s11  ;;  %s1294_s11 = smov %s1160_s28 }
 0x11d   : > { %s1295_s12 = smov %s1150_s23  ;;  %18 = sbr.rel (!%p16_p3) target bundleno = 6 (0x6), region = 77 }
 0x122   :  { %575 = vsyncpa [#allocation3], 1 }
 0x123   :  { %577 = vsyncpa [#allocation3 + $0x1], 1 }
 0x124   :  { %578 = vsyncpa [#allocation6], 1 }
 0x125   :  { %579 = vsyncpa [#allocation4], 1 }
 0x126   :  { %581 = vsyncpa [#allocation4 + $0x1], 1 }

</bundles_post_ra>
